<compile_context>
chip_gen: v7x
topology: tpu7x:2x2x1
jax: 0.10.0
libtpu: 0.0.40
codegen_flags: <defaults>
</compile_context>

<pallas_src>
import jax
import jax.numpy as jnp
from jax import lax
from jax.experimental import pallas as pl
from jax.experimental.pallas import tpu as pltpu


def ensemble_kernel(x_ref, w_ref, b_ref, o_ref):
    """x_ref: (tb, H) compute dtype; w_ref: (H, (K+1)*C_pad) compute dtype
    (VMEM-resident); b_ref: (1, (K+1)*C_pad) f32 (resident);
    o_ref: (tb, C_pad) output dtype."""
    tb = x_ref.shape[0]
    C = o_ref.shape[1]                      # padded class count (multiple of 128)
    n_wide = w_ref.shape[1]
    K = n_wide // C - 1                     # last chunk is the summed-weight chunk

    x = x_ref[...]                          # (tb, H)

    # One wide MXU matmul: all K per-member logits blocks plus the summed
    # logits (last C columns) in a single dot, f32 accumulation.
    logits_all = jnp.dot(x, w_ref[...], preferred_element_type=jnp.float32)
    logits_all = logits_all + b_ref[...]    # (tb, (K+1)*C), f32

    acc_logits = logits_all[:, K * C:]      # == sum_k logits_k (via W_sum/b_sum)

    def lse_of(lk):                         # (tb, C) -> (tb, 1) logsumexp
        m = jnp.max(lk, axis=-1, keepdims=True)
        return m + jnp.log(jnp.sum(jnp.exp(lk - m), axis=-1, keepdims=True))

    if K <= 8:
        # Small static K: unrolled loop over lane-aligned static slices.
        acc_lse = lse_of(logits_all[:, 0:C])
        for k in range(1, K):
            acc_lse = acc_lse + lse_of(logits_all[:, k * C:(k + 1) * C])
    else:
        # Large K: rolled loop, only a (tb,1) carry (no per-iteration (tb,C)
        # accumulator traffic / unroll code bloat).
        def body(k, acc):
            lk = lax.dynamic_slice_in_dim(logits_all, k * C, C, axis=1)
            return acc + lse_of(lk)
        acc_lse = lax.fori_loop(0, K, body, jnp.zeros((tb, 1), jnp.float32),
                                unroll=False)

    # prod_k softmax(logits_k) == exp(sum_k logits_k - sum_k lse_k)
    combined = jnp.exp(acc_logits - acc_lse)                    # (tb, C), f32
    denom = jnp.sum(combined, axis=-1, keepdims=True) + 1e-8    # (tb, 1)
    inv = pl.reciprocal(denom, approx=False)    # tb reciprocals, not tb*C divides
    o_ref[...] = (combined * inv).astype(o_ref.dtype)


def prepare_ensemble_params(w_stack, b_stack, compute_dtype=jnp.bfloat16):
    """One-time prep of the FROZEN ensemble parameters (not per forward call).

    Returns (w_wide, b_wide, C, C_pad):
      w_wide: (H, (K+1)*C_pad), column chunk k = W_k, last chunk = sum_k W_k.
      b_wide: (1, (K+1)*C_pad) f32, matching biases; padded classes get a large
              negative bias so the per-member softmax is unchanged.
    """
    K, H, C = w_stack.shape
    assert b_stack.shape == (K, C)
    C_pad = ((C + 127) // 128) * 128        # lane-dense class dim

    w32 = w_stack.astype(jnp.float32)
    b32 = b_stack.astype(jnp.float32)
    if C_pad != C:
        w32 = jnp.pad(w32, ((0, 0), (0, 0), (0, C_pad - C)))
        b32 = jnp.pad(b32, ((0, 0), (0, C_pad - C)), constant_values=-1e9)

    w_sum = jnp.sum(w32, axis=0, keepdims=True)          # (1, H, C_pad)
    b_sum = jnp.sum(b32, axis=0, keepdims=True)          # (1, C_pad)
    w_all = jnp.concatenate([w32, w_sum], axis=0)        # (K+1, H, C_pad)
    b_all = jnp.concatenate([b32, b_sum], axis=0)        # (K+1, C_pad)

    # (K+1, H, C_pad) -> (H, (K+1)*C_pad): member k occupies a contiguous,
    # 128-aligned column chunk of the wide matmul output.
    w_wide = jnp.transpose(w_all, (1, 0, 2)).reshape(H, (K + 1) * C_pad)
    b_wide = b_all.reshape(1, (K + 1) * C_pad)
    return w_wide.astype(compute_dtype), b_wide, C, C_pad


def multiplicative_ensemble(x, params, *, tb=512, vmem_limit_bytes=None):
    """x: (B, H); params from prepare_ensemble_params  ->  (B, C)."""
    w_wide, b_wide, C, C_pad = params
    B, H = x.shape
    Hw, n_wide = w_wide.shape
    assert Hw == H and b_wide.shape == (1, n_wide)

    # Batch tile: large enough to amortize the ~0.35us/step grid overhead, but
    # capped so the grid has >=2 tiles when B allows (both v7x TCs busy).
    tb = min(tb, B)
    if B > 8:
        half = ((pl.cdiv(B, 2) + 7) // 8) * 8
        tb = min(tb, half)
    if tb != B:
        tb = max(8, (tb // 8) * 8)          # sublane-aligned unless full batch
    grid = (pl.cdiv(B, tb),)

    x_c = x.astype(w_wide.dtype)

    if vmem_limit_bytes is None:
        itemsize = w_wide.dtype.itemsize
        w_bytes = H * n_wide * itemsize
        b_bytes = n_wide * 4
        x_bytes = tb * H * itemsize
        o_bytes = tb * C_pad * x.dtype.itemsize
        logits_bytes = tb * n_wide * 4
        # resident w/b + double-buffered x/out tiles + in-kernel f32 temporaries.
        vmem_limit_bytes = (2 * (w_bytes + b_bytes + x_bytes + o_bytes)
                            + 3 * logits_bytes + (4 << 20))
        vmem_limit_bytes = max(vmem_limit_bytes, 32 << 20)

    out = pl.pallas_call(
        ensemble_kernel,
        out_shape=jax.ShapeDtypeStruct((B, C_pad), x.dtype),
        grid_spec=pltpu.PrefetchScalarGridSpec(
            num_scalar_prefetch=0,
            grid=grid,
            in_specs=[
                # batch tile of activations
                pl.BlockSpec((tb, H), lambda i: (i, 0)),
                # wide weight matrix, resident in VMEM across all batch tiles
                pl.BlockSpec((H, n_wide), lambda i: (0, 0)),
                # wide bias row, resident in VMEM
                pl.BlockSpec((1, n_wide), lambda i: (0, 0)),
            ],
            out_specs=pl.BlockSpec((tb, C_pad), lambda i: (i, 0)),
        ),
        compiler_params=pltpu.CompilerParams(
            dimension_semantics=("parallel",),
            vmem_limit_bytes=vmem_limit_bytes),
    )(x_c, w_wide, b_wide)

    return out[:, :C] if C_pad != C else out


def reference(x, w_stack, b_stack):
    """Pure-JAX reference matching the PyTorch forward (f32 everywhere)."""
    combined = None
    for k in range(w_stack.shape[0]):
        logits = x @ w_stack[k] + b_stack[k]
        p = jax.nn.softmax(logits, axis=-1)
        combined = p if combined is None else combined * p
    return combined / (combined.sum(axis=-1, keepdims=True) + 1e-8)


if __name__ == "__main__":
    B, H, C, K = 8, 32, 128, 3
    key = jax.random.PRNGKey(0)
    kx, kw, kb = jax.random.split(key, 3)

    x = jax.random.normal(kx, (B, H), dtype=jnp.float32)
    # Deterministic synthetic "frozen" ensemble parameters.
    w_stack = 0.1 * jax.random.normal(kw, (K, H, C), dtype=jnp.float32)
    b_stack = 0.1 * jax.random.normal(kb, (K, C), dtype=jnp.float32)

    ref = reference(x, w_stack, b_stack)

    # Exact-ish path: f32 MXU operands (tight check vs the PyTorch-equivalent ref).
    params_f32 = prepare_ensemble_params(w_stack, b_stack, compute_dtype=jnp.float32)
    out_f32 = jax.block_until_ready(multiplicative_ensemble(x, params_f32))
    assert out_f32.shape == (B, C)
    assert jnp.allclose(out_f32, ref, atol=1e-5, rtol=1e-4)

    # Fast path: bf16 MXU operands, f32 accumulation / softmax / combine math.
    params_bf16 = prepare_ensemble_params(w_stack, b_stack, compute_dtype=jnp.bfloat16)
    out_bf16 = jax.block_until_ready(multiplicative_ensemble(x, params_bf16))
    assert out_bf16.shape == (B, C)
    assert jnp.allclose(out_bf16, ref, atol=5e-3, rtol=5e-2)

    print("KERNEL_OK")
</pallas_src>

<mosaic_0001>
module attributes {stable_mosaic.version = 11 : i64} {
  func.func @ensemble_kernel(%arg0: i32, %arg1: memref<8x32xf32, #tpu.memory_space<vmem>>, %arg2: memref<32x512xf32, #tpu.memory_space<vmem>>, %arg3: memref<1x512xf32, #tpu.memory_space<vmem>>, %arg4: memref<8x128xf32, #tpu.memory_space<vmem>>) attributes {dimension_semantics = [#tpu.dimension_semantics<parallel>], iteration_bounds = array<i64: 1>, scalar_prefetch = 0 : i64, scratch_operands = 0 : i64, tpu.core_type = #tpu.core_type<tc>, window_params = [{transform_indices = @transform_0, window_bounds = array<i64: 8, 32>}, {pipeline_mode = #tpu.pipeline_mode<synchronous>, transform_indices = @transform_1, window_bounds = array<i64: 32, 512>}, {pipeline_mode = #tpu.pipeline_mode<synchronous>, transform_indices = @transform_2, window_bounds = array<i64: 1, 512>}, {transform_indices = @transform_3, window_bounds = array<i64: 8, 128>}]} {
    %c0 = arith.constant 0 : index
    %c0_0 = arith.constant 0 : index
    %0 = vector.load %arg1[%c0, %c0_0] : memref<8x32xf32, #tpu.memory_space<vmem>>, vector<8x32xf32>
    %c0_1 = arith.constant 0 : index
    %c0_2 = arith.constant 0 : index
    %1 = vector.load %arg2[%c0_1, %c0_2] : memref<32x512xf32, #tpu.memory_space<vmem>>, vector<32x512xf32>
    %cst = arith.constant dense<0.000000e+00> : vector<8x512xf32>
    %2 = tpu.matmul %0, %1, %cst {dimension_numbers = #tpu.dot_dimension_numbers<[1], [0], [0], [1], [0, 0, 1, 1], [], []>} : vector<8x32xf32>, vector<32x512xf32>, vector<8x512xf32> -> vector<8x512xf32>
    %c0_3 = arith.constant 0 : index
    %c0_4 = arith.constant 0 : index
    %3 = vector.load %arg3[%c0_3, %c0_4] : memref<1x512xf32, #tpu.memory_space<vmem>>, vector<1x512xf32>
    %4 = vector.broadcast %3 : vector<1x512xf32> to vector<8x512xf32>
    %5 = arith.addf %2, %4 : vector<8x512xf32>
    %6 = vector.extract_strided_slice %5 {offsets = [0, 384], sizes = [8, 128], strides = [1, 1]} : vector<8x512xf32> to vector<8x128xf32>
    %7 = vector.extract_strided_slice %5 {offsets = [0, 0], sizes = [8, 128], strides = [1, 1]} : vector<8x512xf32> to vector<8x128xf32>
    %cst_5 = arith.constant dense<0xFF800000> : vector<8xf32>
    %8 = vector.multi_reduction <maximumf>, %7, %cst_5 [1] : vector<8x128xf32> to vector<8xf32>
    %9 = vector.shape_cast %8 : vector<8xf32> to vector<8x1xf32>
    %10 = vector.broadcast %9 : vector<8x1xf32> to vector<8x128xf32>
    %11 = arith.subf %7, %10 : vector<8x128xf32>
    %12 = math.exp %11 : vector<8x128xf32>
    %cst_6 = arith.constant dense<0.000000e+00> : vector<8xf32>
    %13 = vector.multi_reduction <add>, %12, %cst_6 [1] : vector<8x128xf32> to vector<8xf32>
    %14 = vector.shape_cast %13 : vector<8xf32> to vector<8x1xf32>
    %15 = math.log %14 : vector<8x1xf32>
    %16 = arith.addf %9, %15 : vector<8x1xf32>
    %17 = vector.extract_strided_slice %5 {offsets = [0, 128], sizes = [8, 128], strides = [1, 1]} : vector<8x512xf32> to vector<8x128xf32>
    %cst_7 = arith.constant dense<0xFF800000> : vector<8xf32>
    %18 = vector.multi_reduction <maximumf>, %17, %cst_7 [1] : vector<8x128xf32> to vector<8xf32>
    %19 = vector.shape_cast %18 : vector<8xf32> to vector<8x1xf32>
    %20 = vector.broadcast %19 : vector<8x1xf32> to vector<8x128xf32>
    %21 = arith.subf %17, %20 : vector<8x128xf32>
    %22 = math.exp %21 : vector<8x128xf32>
    %cst_8 = arith.constant dense<0.000000e+00> : vector<8xf32>
    %23 = vector.multi_reduction <add>, %22, %cst_8 [1] : vector<8x128xf32> to vector<8xf32>
    %24 = vector.shape_cast %23 : vector<8xf32> to vector<8x1xf32>
    %25 = math.log %24 : vector<8x1xf32>
    %26 = arith.addf %19, %25 : vector<8x1xf32>
    %27 = arith.addf %16, %26 : vector<8x1xf32>
    %28 = vector.extract_strided_slice %5 {offsets = [0, 256], sizes = [8, 128], strides = [1, 1]} : vector<8x512xf32> to vector<8x128xf32>
    %cst_9 = arith.constant dense<0xFF800000> : vector<8xf32>
    %29 = vector.multi_reduction <maximumf>, %28, %cst_9 [1] : vector<8x128xf32> to vector<8xf32>
    %30 = vector.shape_cast %29 : vector<8xf32> to vector<8x1xf32>
    %31 = vector.broadcast %30 : vector<8x1xf32> to vector<8x128xf32>
    %32 = arith.subf %28, %31 : vector<8x128xf32>
    %33 = math.exp %32 : vector<8x128xf32>
    %cst_10 = arith.constant dense<0.000000e+00> : vector<8xf32>
    %34 = vector.multi_reduction <add>, %33, %cst_10 [1] : vector<8x128xf32> to vector<8xf32>
    %35 = vector.shape_cast %34 : vector<8xf32> to vector<8x1xf32>
    %36 = math.log %35 : vector<8x1xf32>
    %37 = arith.addf %30, %36 : vector<8x1xf32>
    %38 = arith.addf %27, %37 : vector<8x1xf32>
    %39 = vector.broadcast %38 : vector<8x1xf32> to vector<8x128xf32>
    %40 = arith.subf %6, %39 : vector<8x128xf32>
    %41 = math.exp %40 : vector<8x128xf32>
    %cst_11 = arith.constant dense<0.000000e+00> : vector<8xf32>
    %42 = vector.multi_reduction <add>, %41, %cst_11 [1] : vector<8x128xf32> to vector<8xf32>
    %43 = vector.shape_cast %42 : vector<8xf32> to vector<8x1xf32>
    %cst_12 = arith.constant 9.99999993E-9 : f32
    %44 = vector.broadcast %cst_12 : f32 to vector<8x1xf32>
    %45 = arith.addf %43, %44 : vector<8x1xf32>
    %46 = tpu.reciprocal %45 : vector<8x1xf32> -> vector<8x1xf32>
    %47 = vector.broadcast %46 : vector<8x1xf32> to vector<8x128xf32>
    %48 = arith.mulf %41, %47 : vector<8x128xf32>
    %c0_13 = arith.constant 0 : index
    %c0_14 = arith.constant 0 : index
    %49 = vector.load %arg4[%c0_13, %c0_14] : memref<8x128xf32, #tpu.memory_space<vmem>>, vector<8x128xf32>
    tpu.vector_store %arg4[%c0_13, %c0_14], %48 {strides = array<i32>} : memref<8x128xf32, #tpu.memory_space<vmem>>, vector<8x128xf32>,
    return
  }
  func.func @transform_0(%arg0: i32) -> (i32, i32) {
    %c0_i32 = arith.constant 0 : i32
    %c0_i32_0 = arith.constant 0 : i32
    return %arg0, %c0_i32 : i32, i32
  }
  func.func @transform_1(%arg0: i32) -> (i32, i32) {
    %c0_i32 = arith.constant 0 : i32
    %c0_i32_0 = arith.constant 0 : i32
    %c0_i32_1 = arith.constant 0 : i32
    return %c0_i32, %c0_i32_0 : i32, i32
  }
  func.func @transform_2(%arg0: i32) -> (i32, i32) {
    %c0_i32 = arith.constant 0 : i32
    %c0_i32_0 = arith.constant 0 : i32
    %c0_i32_1 = arith.constant 0 : i32
    return %c0_i32, %c0_i32_0 : i32, i32
  }
  func.func @transform_3(%arg0: i32) -> (i32, i32) {
    %c0_i32 = arith.constant 0 : i32
    %c0_i32_0 = arith.constant 0 : i32
    return %arg0, %c0_i32 : i32, i32
  }
}

</mosaic_0001>

<bundles_post_ra>
// kernel: tpu_custom_call.1
= control target key start
LH: loop header
LB: loop body
LE: loop exit
PB: predicated region body
PF: predicated region fallthrough
CT: control target
= control target key end

     0   :  { %8 = vsyncpa [#allocation3], 0  ;;  %s467_s0 = inlined_call_operand.hbm [shape: f32[8,32], index: 0, kind: input, shape index: {}]   ;;  %s468_s1 = inlined_call_operand.hbm [shape: f32[32,512], index: 1, kind: input, shape index: {}]   ;;  %s469_s2 = inlined_call_operand.vmem [shape: f32[1,512], index: 2, kind: input, shape index: {}]   ;;  %s470_s3 = inlined_call_operand.hbm [shape: f32[8,128], index: 3, kind: output, shape index: {}]  }
   0x1   :  { %9 = vsyncpa [#allocation6], 0 }
   0x2   :  { %10 = vsyncpa [#allocation4], 0  ;;  %s395_s12 = smov [#allocation2]   ;;  %s396_s14 = smov [#allocation5]  }
   0x3   :  { %s17_s13 = sshll.u32 %s395_s12, 4  ;;  %s26_s15 = sshll.u32 %s396_s14, 4  ;;  %s18_s13 = int_to_ptr.vmem [resolvable:$true] %s17_s13  ;;  %s421_s15 = int_to_ptr.vmem [resolvable:$true] %s26_s15 }
   0x4   :  { %s323_s18 = scalar_lea.hbm %s467_s0, 128 }
   0x5   :  { %p324_p0 = scmp.ne.s32.totalorder %s467_s0, %s323_s18  ;;  %p327_p1 = scmp.lt.u32.totalorder %s323_s18, %s467_s0 }
   0x7   :  { %p329_p2 = pnand %p327_p1, %p324_p0 }
   0x9   :  { %332 = shalt.err (!%p329_p2)
}
   0xa   :  { %s333_s23 = scalar_lea.vmem %s18_s13, 128  ;;  %p338_p4 = scmp.lt.s32.totalorder %s18_s13, %s18_s13 }
   0xb   :  { %p334_p3 = scmp.ne.s32.totalorder %s18_s13, %s333_s23  ;;  %p339_p5 = scmp.lt.s32.totalorder %s333_s23, %s333_s23 }
   0xd   :  { %p340_p6 = por %p339_p5, %p338_p4 }
   0xf   :  { %p341_p7 = pnand %p340_p6, %p334_p3 }
  0x11   :  { %344 = shalt.err (!%p341_p7)
}
  0x12   :  { %20 = dma.hbm_to_vmem [thread:$0]  %s467_s0, 128, %s18_s13, [#allocation3]  }
  0x13   :  { %s345_s28 = scalar_lea.hbm %s468_s1, 2048 }
  0x14   :  { %p346_p8 = scmp.ne.s32.totalorder %s468_s1, %s345_s28  ;;  %p349_p9 = scmp.lt.u32.totalorder %s345_s28, %s468_s1 }
  0x16   :  { %p351_p10 = pnand %p349_p9, %p346_p8 }
  0x18   :  { %354 = shalt.err (!%p351_p10)
}
  0x19   :  { %s355_s6 = scalar_lea.vmem %s421_s15, 2048  ;;  %p360_p12 = scmp.lt.s32.totalorder %s421_s15, %s421_s15 }
  0x1a   :  { %p356_p11 = scmp.ne.s32.totalorder %s421_s15, %s355_s6  ;;  %p361_p13 = scmp.lt.s32.totalorder %s355_s6, %s355_s6 }
  0x1c   :  { %p362_p0 = por %p361_p13, %p360_p12 }
  0x1e   :  { %p363_p1 = pnand %p362_p0, %p356_p11 }
  0x20   :  { %366 = shalt.err (!%p363_p1)
}
  0x21   :  { %s397_s0 = smov 512   ;;  %s398_s7 = smov 32  }
  0x22   :  { %32 = dma.hbm_to_vmem [thread:$0]  %s468_s1, 2048, %s421_s15, [#allocation6], %s397_s0, %s397_s0, %s398_s7  }
  0x23   :  { %389 = dma.done.wait [#allocation3], 128  }
  0x24   :  { %390 = vsyncadd [#allocation3], 4294967168 }
  0x25   :  { %391 = dma.done.wait [#allocation6], 2048  }
  0x26   :  { %392 = vsyncadd [#allocation6], 4294965248  ;;  %v399_v0 = vmov 0.0   ;;  %v43_v1 = vld [vmem:[#allocation5 + $0x8] sm:$0xff]  ;;  %v45_v3 = vld [vmem:[#allocation5 + $0x18] sm:$0xff]  ;;  %vm80_vm0 = vcmask 261120   ;;  %v60_v26 = vlaneseq }
  0x27   :  { %148 = vmatprep.mubr.f32.mxu0 %v399_v0  ;;  %219 = vmatprep.mubr.f32.mxu1 %v399_v0  ;;  %v47_v2 = vld [vmem:[#allocation5 + $0x28] sm:$0xff]  ;;  %v49_v5 = vld [vmem:[#allocation5 + $0x38] sm:$0xff]  ;;  %v42_v6 = vld [vmem:[#allocation5] sm:$0xff] }
  0x28   :  { %v285_v4 = vpack.c.bf16 %v47_v2, %v43_v1  ;;  %v46_v7 = vld [vmem:[#allocation5 + $0x20] sm:$0xff]  ;;  %v293_v8 = vpack.c.bf16 %v49_v5, %v45_v3  ;;  %v44_v10 = vld [vmem:[#allocation5 + $0x10] sm:$0xff]  ;;  %v51_v12 = vld [vmem:[#allocation5 + $0x48] sm:$0xff]  ;;  %v61_v27 = vshrl.u32 %v60_v26, 7 }
  0x29   :  { %v287_v9 = vpack.c.bf16 %v46_v7, %v42_v6  ;;  %v48_v11 = vld [vmem:[#allocation5 + $0x30] sm:$0xff]  ;;  %v55_v14 = vld [vmem:[#allocation5 + $0x68] sm:$0xff]  ;;  %v53_v15 = vld [vmem:[#allocation5 + $0x58] sm:$0xff] }
  0x2a   :  { %286 = vmatprep.subr.bf16.mxu0 %v285_v4  ;;  %v295_v13 = vpack.c.bf16 %v48_v11, %v44_v10  ;;  %v57_v16 = vld [vmem:[#allocation5 + $0x78] sm:$0xff]  ;;  %294 = vmatprep.subr.bf16.mxu1 %v293_v8  ;;  %v289_v17 = vpack.c.bf16 %v55_v14, %v51_v12  ;;  %v50_v19 = vld [vmem:[#allocation5 + $0x40] sm:$0xff]  ;;  %v52_v21 = vld [vmem:[#allocation5 + $0x50] sm:$0xff]  ;;  %v62_v28 = vsub.s32 0, %v61_v27  ;;  %v70_v30 = vsub.s32 2, %v61_v27 }
  0x2b   :  { %288 = vmatpush1.bf16.msra.mxu0 %v287_v9  ;;  %v297_v18 = vpack.c.bf16 %v57_v16, %v53_v15  ;;  %v54_v20 = vld [vmem:[#allocation5 + $0x60] sm:$0xff]  ;;  %v56_v23 = vld [vmem:[#allocation5 + $0x70] sm:$0xff]  ;;  %v41_v25 = vld [vmem:[#allocation2] sm:$0xff]  ;;  %v66_v32 = vsub.s32 1, %v61_v27  ;;  %v74_v59 = vsub.s32 3, %v61_v27 }
  0x2c   :  { %296 = vmatpush1.bf16.msra.mxu1 %v295_v13  ;;  %v291_v22 = vpack.c.bf16 %v54_v20, %v50_v19  ;;  %290 = vmatprep.subr.bf16.mxu0 %v289_v17  ;;  %v299_v24 = vpack.c.bf16 %v56_v23, %v52_v21  ;;  %v58_v29 = vld [vmem:[%s469_s2] sm:$0xf]  ;;  %s400_s2 = smov [#allocation7]  }
  0x2d   :  { %298 = vmatprep.subr.bf16.mxu1 %v297_v18  ;;  %v63_v31 = vrot.slane %v58_v29, %v62_v28  ;;  %v71_v33 = vrot.slane %v58_v29, %v70_v30  ;;  %v67_v37 = vrot.slane %v58_v29, %v66_v32  ;;  %v75_v0 = vrot.slane %v58_v29, %v74_v59  ;;  %s273_s11 = sshll.u32 %s400_s2, 4  ;;  %s274_s11 = int_to_ptr.vmem [resolvable:$true] %s273_s11 }
  0x2e   :  { %s367_s12 = scalar_lea.vmem %s274_s11, 128  ;;  %p372_p3 = scmp.lt.s32.totalorder %s274_s11, %s274_s11 }
  0x2f   :  { %292 = vmatpush1.bf16.msra.mxu0 %v291_v22  ;;  %p368_p2 = scmp.ne.s32.totalorder %s274_s11, %s367_s12  ;;  %p373_p4 = scmp.lt.s32.totalorder %s367_s12, %s367_s12 }
  0x30   :  { %300 = vmatpush1.bf16.msra.mxu1 %v299_v24 }
  0x31   :  { %p374_p5 = por %p373_p4, %p372_p3 }
  0x32   :  { %283 = vmatmul.mubr.msk.f32.vlgmr.msra.gmra.mrb[0].mxu0 %vm80_vm0, %v41_v25 }
  0x33   :  { %284 = vmatmul.mubr.msk.f32.vlgmr.msra.gmra.mrb[0].mxu1 %vm80_vm0, %v41_v25  ;;  %p375_p6 = pnand %p374_p5, %p368_p2 }
 0x105   :  { %v150_v34 = vpop.f32.mrb[0].mxu0 }
 0x106   :  { %v151_v35 = vadd.f32 %v150_v34, %v63_v31  ;;  %v221_v36 = vpop.f32.mrb[0].mxu1  ;;  %v152_v38 = vpop.f32.mrb[1].mxu0 }
 0x107   :  { %v222_v39 = vadd.f32 %v221_v36, %v71_v33  ;;  %v223_v40 = vpop.f32.mrb[1].mxu1  ;;  %v153_v41 = vadd.f32 %v152_v38, %v67_v37 }
 0x108   :  { %226 = vmax.xlane.f32.xlu0 %v151_v35  ;;  %v224_v5 = vadd.f32 %v223_v40, %v75_v0 }
 0x109   :  { %247 = vmax.xlane.f32.xlu1 %v222_v39 }
 0x10c   :  { %236 = vmax.xlane.f32.xlu0 %v153_v41 }
 0x195   :  { %v227_v42 = vpop.xlane.xlu0 %226 }
 0x196   :  { %v248_v43 = vpop.xlane.xlu1 %247  ;;  %v228_v44 = vsub.f32 %v151_v35, %v227_v42 }
 0x197   :  { %v249_v45 = vsub.f32 %v222_v39, %v248_v43 }
 0x198   :  { %v229_v46 = vmul.f32 1.442695, %v228_v44 }
 0x199   :  { %v250_v47 = vmul.f32 1.442695, %v249_v45  ;;  %v237_v48 = vpop.xlane.xlu0 %236 }
 0x19a   :  { %307 = vpow2.f32 %v229_v46  ;;  %v238_v49 = vsub.f32 %v153_v41, %v237_v48 }
 0x19b   :  { %309 = vpow2.f32 %v250_v47 }
 0x19c   :  { %v239_v50 = vmul.f32 1.442695, %v238_v49 }
 0x19e   :  { %311 = vpow2.f32 %v239_v50 }
 0x1a4   :  { %v308_v51 = vpop.eup %307 }
 0x1a5   :  { %231 = vadd.xlane.f32.xlu1 %v308_v51  ;;  %v310_v52 = vpop.eup %309 }
 0x1a8   :  { %v312_v53 = vpop.eup %311 }
 0x1a9   :  { %252 = vadd.xlane.f32.xlu1 %v310_v52  ;;  %241 = vadd.xlane.f32.xlu0 %v312_v53 }
 0x232   :  { %v232_v54 = vpop.xlane.xlu1 %231 }
 0x233   :  { %313 = vlog2.f32 %v232_v54 }
 0x236   :  { %v253_v55 = vpop.xlane.xlu1 %252  ;;  %v242_v56 = vpop.xlane.xlu0 %241 }
 0x237   :  { %315 = vlog2.f32 %v253_v55 }
 0x238   :  { %317 = vlog2.f32 %v242_v56 }
 0x23d   :  { %v314_v57 = vpop.eup %313 }
 0x23e   :  { %v234_v60 = vmul.f32 0.6931472, %v314_v57 }
 0x240   :  { %v235_v1 = vadd.f32 %v234_v60, %v227_v42 }
 0x241   :  { %v316_v58 = vpop.eup %315 }
 0x242   :  { %v318_v61 = vpop.eup %317  ;;  %v255_v62 = vmul.f32 0.6931472, %v316_v58 }
 0x243   :  { %v244_v63 = vmul.f32 0.6931472, %v318_v61 }
 0x244   :  { %v256_v3 = vadd.f32 %v255_v62, %v248_v43 }
 0x245   :  { %v245_v2 = vadd.f32 %v244_v63, %v237_v48 }
 0x247   :  { %v246_v4 = vadd.f32 %v245_v2, %v235_v1 }
 0x249   :  { %v257_v6 = vadd.f32 %v256_v3, %v246_v4 }
 0x24b   :  { %v258_v7 = vsub.f32 %v224_v5, %v257_v6 }
 0x24d   :  { %v259_v8 = vmul.f32 1.442695, %v258_v7 }
 0x24f   :  { %319 = vpow2.f32 %v259_v8 }
 0x259   :  { %v320_v9 = vpop.eup %319 }
 0x25a   :  { %261 = vadd.xlane.f32.xlu0 %v320_v9 }
 0x2e7   :  { %v262_v10 = vpop.xlane.xlu0 %261 }
 0x2e8   :  { %v263_v11 = vadd.f32 1e-08, %v262_v10 }
 0x2ea   :  { %321 = vrcp.f32 %v263_v11 }
 0x2f4   :  { %v322_v12 = vpop.eup %321 }
 0x2f5   :  { %v265_v13 = vmul.f32 %v322_v12, %v320_v9 }
 0x2f7   :  { %266 = vst [vmem:[#allocation7] sm:$0xff] %v265_v13 }
 0x2f8   :  { %378 = shalt.err (!%p375_p6)
}
 0x2f9   :  { %s379_s15 = scalar_lea.hbm %s470_s3, 128 }
 0x2fa   :  { %p380_p7 = scmp.ne.s32.totalorder %s470_s3, %s379_s15  ;;  %p383_p8 = scmp.lt.u32.totalorder %s379_s15, %s470_s3 }
 0x2fc   :  { %p385_p9 = pnand %p383_p8, %p380_p7 }
 0x2fe   :  { %388 = shalt.err (!%p385_p9)
}
 0x2ff   :  { %276 = dma.vmem_to_hbm [thread:$0]  %s274_s11, 128, %s470_s3, [#allocation4]  }
 0x300   :  { %393 = dma.done.wait [#allocation4], 128  }
 0x301   :  { %394 = vsyncadd [#allocation4], 4294967168 }
 0x302   :  { %280 = vsyncpa [#allocation3], 1 }
 0x303   :  { %281 = vsyncpa [#allocation6], 1 }
 0x304   :  { %282 = vsyncpa [#allocation4], 1 }

</bundles_post_ra>
